<compile_context>
chip_gen: v5e
topology: v5e:2x2
jax: 0.10.0
libtpu: 0.0.40
codegen_flags: <defaults>
</compile_context>

<pallas_src>
import math
import functools

import jax
import jax.numpy as jnp
from jax import lax
from jax.experimental import pallas as pl
from jax.experimental.pallas import tpu as pltpu


def _round_up(x: int, m: int) -> int:
    return ((x + m - 1) // m) * m


def _token_embed_gather_kernel(tok_ref, emb_hbm_ref, out_ref, rows_ref, sem,
                               *, scale, token_block):
    # tok_ref:     (n_pad,) int32 in SMEM (scalar-prefetched, padded token ids)
    # emb_hbm_ref: (V, D) table, resident in HBM (pl.ANY) -- DMA'd row by row
    # out_ref:     (TB, D) output block in VMEM
    # rows_ref:    (2, TB, D) VMEM double buffer the row DMAs land in
    # sem:         (2,) DMA semaphores, one per buffer slot
    i = pl.program_id(0)
    n_tiles = pl.num_programs(0)
    slot = lax.rem(i, 2)

    def issue_tile(tile_idx, slot_idx):
        base = tile_idx * token_block

        def body(t, carry):
            row = tok_ref[base + t]                       # scalar read from SMEM
            pltpu.make_async_copy(
                emb_hbm_ref.at[pl.ds(row, 1)],            # (1, D) row in HBM
                rows_ref.at[slot_idx, pl.ds(t, 1)],       # (1, D) slot in VMEM
                sem.at[slot_idx],
            ).start()
            return carry

        lax.fori_loop(0, token_block, body, 0)

    # Prime the pipeline: tile 0's gather is only issued on the very first step.
    @pl.when(i == 0)
    def _():
        issue_tile(0, 0)

    # Prefetch the NEXT tile's rows into the other slot before draining this
    # one, so its HBM latency overlaps with this tile's drain/scale/store.
    @pl.when(i + 1 < n_tiles)
    def _():
        issue_tile(i + 1, 1 - slot)

    # Single wait covering all `token_block` row copies of this tile
    # (DMA semaphores count bytes; TB * row_bytes == this descriptor's size).
    pltpu.make_async_copy(
        emb_hbm_ref.at[pl.ds(0, token_block)],
        rows_ref.at[slot],
        sem.at[slot],
    ).wait()

    # Fused sqrt(D) scale; padded tail rows (token id 0) are sliced off by the
    # wrapper.
    out_ref[...] = (rows_ref[slot] * scale).astype(out_ref.dtype)


def token_embedding(tokens, emb_table, *, token_block=256):
    """tokens: (B, S) int -> (B, S, D) = emb_table[tokens] * sqrt(D)."""
    B, S = tokens.shape
    V, D = emb_table.shape
    scale = math.sqrt(float(D))   # matches torch.sqrt(torch.tensor(embedding_dim))

    n = B * S
    # Tile size: multiple of 8 (sublane), never larger than needed.
    tb = _round_up(min(token_block, n), 8)
    n_pad = _round_up(n, tb)
    grid = (n_pad // tb,)

    tok_flat = jnp.reshape(tokens, (n,)).astype(jnp.int32)
    if n_pad != n:
        # Pad with id 0 (a valid row) so every tile issues exactly `tb` DMAs.
        tok_flat = jnp.pad(tok_flat, (0, n_pad - n))

    kernel = functools.partial(
        _token_embed_gather_kernel, scale=scale, token_block=tb)

    out = pl.pallas_call(
        kernel,
        out_shape=jax.ShapeDtypeStruct((n_pad, D), emb_table.dtype),
        grid_spec=pltpu.PrefetchScalarGridSpec(
            num_scalar_prefetch=1,                       # token ids -> SMEM
            grid=grid,
            in_specs=[
                pl.BlockSpec(memory_space=pl.ANY),       # table stays in HBM
            ],
            out_specs=pl.BlockSpec((tb, D), lambda i, tok: (i, 0)),
            scratch_shapes=[
                pltpu.VMEM((2, tb, D), emb_table.dtype),  # double-buffered rows
                pltpu.SemaphoreType.DMA((2,)),            # one DMA sem per slot
            ],
        ),
        compiler_params=pltpu.CompilerParams(
            # Cross-step prefetch carries state in scratch -> sequential axis.
            dimension_semantics=("arbitrary",)),
    )(tok_flat, emb_table)

    return out[:n].reshape(B, S, D)


if __name__ == "__main__":
    # Small, deterministic setup consistent with the module's forward.
    vocab_size = 64
    embedding_dim = 128
    batch, seq = 2, 8

    key = jax.random.PRNGKey(0)
    k_emb, k_tok, k_tok2 = jax.random.split(key, 3)

    # Deterministic parameter init (nn.Embedding weight ~ N(0, 1) by default).
    emb_table = jax.random.normal(k_emb, (vocab_size, embedding_dim),
                                  dtype=jnp.float32)
    tokens = jax.random.randint(k_tok, (batch, seq), 0, vocab_size,
                                dtype=jnp.int32)

    ref = jnp.take(emb_table, tokens, axis=0) * math.sqrt(float(embedding_dim))

    # Default (single-tile) path.
    out = jax.block_until_ready(token_embedding(tokens, emb_table))
    assert out.shape == (batch, seq, embedding_dim)
    assert jnp.allclose(out, ref, atol=1e-5, rtol=1e-5)

    # Multi-tile path (grid > 1): exercises the cross-tile prefetch pipeline.
    out_multi = jax.block_until_ready(
        token_embedding(tokens, emb_table, token_block=8))
    assert jnp.allclose(out_multi, ref, atol=1e-5, rtol=1e-5)

    # Ragged path: n not a multiple of the tile -> exercises the padded tail
    # tile (pad ids gather row 0 and are sliced off).
    tokens2 = jax.random.randint(k_tok2, (batch, 9), 0, vocab_size,
                                 dtype=jnp.int32)
    ref2 = jnp.take(emb_table, tokens2, axis=0) * math.sqrt(float(embedding_dim))
    out_ragged = jax.block_until_ready(
        token_embedding(tokens2, emb_table, token_block=8))
    assert jnp.allclose(out_ragged, ref2, atol=1e-5, rtol=1e-5)

    print("KERNEL_OK")
</pallas_src>

<mosaic_0001>
module attributes {stable_mosaic.version = 11 : i64} {
  func.func @_token_embed_gather_kernel(%arg0: i32, %arg1: memref<16xi32, #tpu.memory_space<smem>>, %arg2: memref<64x128xf32, #tpu.memory_space<any>>, %arg3: memref<16x128xf32, #tpu.memory_space<vmem>>, %arg4: memref<2x16x128xf32, #tpu.memory_space<vmem>>, %arg5: memref<2x!tpu.dma_semaphore, #tpu.memory_space<semaphore_mem>>) attributes {dimension_semantics = [#tpu.dimension_semantics<arbitrary>], iteration_bounds = array<i64: 1>, scalar_prefetch = 1 : i64, scratch_operands = 2 : i64, tpu.core_type = #tpu.core_type<tc>, window_params = [{}, {transform_indices = @transform_1, window_bounds = array<i64: 16, 128>}]} {
    %c2_i32 = arith.constant 2 : i32
    %0 = arith.remsi %arg0, %c2_i32 : i32
    %c0_i32 = arith.constant 0 : i32
    %1 = arith.cmpi eq, %arg0, %c0_i32 : i32
    %2 = arith.extui %1 : i1 to i32
    %c0_i32_0 = arith.constant 0 : i32
    %3 = arith.cmpi ne, %2, %c0_i32_0 : i32
    scf.if %3 {
      %c0_i32_10 = arith.constant 0 : i32
      %c16_i32 = arith.constant 16 : i32
      %19 = arith.addi %c0_i32_10, %c16_i32 : i32
      %c1_i32_11 = arith.constant 1 : i32
      scf.for %arg6 = %c0_i32_10 to %19 step %c1_i32_11  : i32 {
        %c0_i32_13 = arith.constant 0 : i32
        %20 = arith.addi %c0_i32_13, %arg6 : i32
        %21 = arith.index_cast %20 : i32 to index
        %22 = memref.load %arg1[%21] : memref<16xi32, #tpu.memory_space<smem>>
        %c0_i32_14 = arith.constant 0 : i32
        %c0_i32_15 = arith.constant 0 : i32
        %c0_i32_16 = arith.constant 0 : i32
        %23 = tpu.memref_slice %arg2[%22, %c0_i32_16] : memref<64x128xf32, #tpu.memory_space<any>> -> memref<1x128xf32, #tpu.memory_space<any>>
        %c0_i32_17 = arith.constant 0 : i32
        %24 = tpu.memref_slice %arg4[%c0_i32_14, %arg6, %c0_i32_17] : memref<2x16x128xf32, #tpu.memory_space<vmem>> -> memref<1x1x128xf32, #tpu.memory_space<vmem>>
        %25 = tpu.memref_squeeze %24 : memref<1x1x128xf32, #tpu.memory_space<vmem>> -> memref<1x128xf32, #tpu.memory_space<vmem>>
        %26 = tpu.memref_slice %arg5[%c0_i32_15] : memref<2x!tpu.dma_semaphore, #tpu.memory_space<semaphore_mem>> -> memref<1x!tpu.dma_semaphore, #tpu.memory_space<semaphore_mem>>
        %27 = tpu.memref_squeeze %26 : memref<1x!tpu.dma_semaphore, #tpu.memory_space<semaphore_mem>> -> memref<!tpu.dma_semaphore, #tpu.memory_space<semaphore_mem>>
        tpu.enqueue_dma source(%23 : memref<1x128xf32, #tpu.memory_space<any>>) target(%25 : memref<1x128xf32, #tpu.memory_space<vmem>>) target_semaphore(%27 : memref<!tpu.dma_semaphore, #tpu.memory_space<semaphore_mem>>)
      }
      %c16_i32_12 = arith.constant 16 : i32
    } else {
    }
    %c1_i32 = arith.constant 1 : i32
    %4 = arith.addi %arg0, %c1_i32 : i32
    %c1_i32_1 = arith.constant 1 : i32
    %5 = arith.cmpi slt, %4, %c1_i32_1 : i32
    %6 = arith.extui %5 : i1 to i32
    %c0_i32_2 = arith.constant 0 : i32
    %7 = arith.cmpi ne, %6, %c0_i32_2 : i32
    scf.if %7 {
      %c1_i32_10 = arith.constant 1 : i32
      %19 = arith.addi %arg0, %c1_i32_10 : i32
      %c1_i32_11 = arith.constant 1 : i32
      %20 = arith.subi %c1_i32_11, %0 : i32
      %c16_i32 = arith.constant 16 : i32
      %21 = arith.muli %19, %c16_i32 : i32
      %c0_i32_12 = arith.constant 0 : i32
      %c16_i32_13 = arith.constant 16 : i32
      %22 = arith.addi %c0_i32_12, %c16_i32_13 : i32
      %c1_i32_14 = arith.constant 1 : i32
      scf.for %arg6 = %c0_i32_12 to %22 step %c1_i32_14  : i32 {
        %23 = arith.addi %21, %arg6 : i32
        %24 = arith.index_cast %23 : i32 to index
        %25 = memref.load %arg1[%24] : memref<16xi32, #tpu.memory_space<smem>>
        %c0_i32_16 = arith.constant 0 : i32
        %26 = tpu.memref_slice %arg2[%25, %c0_i32_16] : memref<64x128xf32, #tpu.memory_space<any>> -> memref<1x128xf32, #tpu.memory_space<any>>
        %c0_i32_17 = arith.constant 0 : i32
        %27 = tpu.memref_slice %arg4[%20, %arg6, %c0_i32_17] : memref<2x16x128xf32, #tpu.memory_space<vmem>> -> memref<1x1x128xf32, #tpu.memory_space<vmem>>
        %28 = tpu.memref_squeeze %27 : memref<1x1x128xf32, #tpu.memory_space<vmem>> -> memref<1x128xf32, #tpu.memory_space<vmem>>
        %29 = tpu.memref_slice %arg5[%20] : memref<2x!tpu.dma_semaphore, #tpu.memory_space<semaphore_mem>> -> memref<1x!tpu.dma_semaphore, #tpu.memory_space<semaphore_mem>>
        %30 = tpu.memref_squeeze %29 : memref<1x!tpu.dma_semaphore, #tpu.memory_space<semaphore_mem>> -> memref<!tpu.dma_semaphore, #tpu.memory_space<semaphore_mem>>
        tpu.enqueue_dma source(%26 : memref<1x128xf32, #tpu.memory_space<any>>) target(%28 : memref<1x128xf32, #tpu.memory_space<vmem>>) target_semaphore(%30 : memref<!tpu.dma_semaphore, #tpu.memory_space<semaphore_mem>>)
      }
      %c16_i32_15 = arith.constant 16 : i32
    } else {
    }
    %c0_i32_3 = arith.constant 0 : i32
    %c0_i32_4 = arith.constant 0 : i32
    %8 = tpu.memref_slice %arg2[%c0_i32_3, %c0_i32_4] : memref<64x128xf32, #tpu.memory_space<any>> -> memref<16x128xf32, #tpu.memory_space<any>>
    %c0_i32_5 = arith.constant 0 : i32
    %c0_i32_6 = arith.constant 0 : i32
    %9 = tpu.memref_slice %arg4[%0, %c0_i32_5, %c0_i32_6] : memref<2x16x128xf32, #tpu.memory_space<vmem>> -> memref<1x16x128xf32, #tpu.memory_space<vmem>>
    %10 = tpu.memref_squeeze %9 : memref<1x16x128xf32, #tpu.memory_space<vmem>> -> memref<16x128xf32, #tpu.memory_space<vmem>>
    %11 = tpu.memref_slice %arg5[%0] : memref<2x!tpu.dma_semaphore, #tpu.memory_space<semaphore_mem>> -> memref<1x!tpu.dma_semaphore, #tpu.memory_space<semaphore_mem>>
    %12 = tpu.memref_squeeze %11 : memref<1x!tpu.dma_semaphore, #tpu.memory_space<semaphore_mem>> -> memref<!tpu.dma_semaphore, #tpu.memory_space<semaphore_mem>>
    tpu.wait_dma2 semaphore(%12 : memref<!tpu.dma_semaphore, #tpu.memory_space<semaphore_mem>>) src(%8 : memref<16x128xf32, #tpu.memory_space<any>>) dst(%10 : memref<16x128xf32, #tpu.memory_space<vmem>>)
    %13 = arith.index_cast %0 : i32 to index
    %c0 = arith.constant 0 : index
    %c0_7 = arith.constant 0 : index
    %14 = vector.load %arg4[%13, %c0, %c0_7] : memref<2x16x128xf32, #tpu.memory_space<vmem>>, vector<1x16x128xf32>
    %15 = vector.shape_cast %14 : vector<1x16x128xf32> to vector<16x128xf32>
    %cst = arith.constant 11.3137083 : f32
    %16 = vector.broadcast %cst : f32 to vector<16x128xf32>
    %17 = arith.mulf %15, %16 : vector<16x128xf32>
    %c0_8 = arith.constant 0 : index
    %c0_9 = arith.constant 0 : index
    %18 = vector.load %arg3[%c0_8, %c0_9] : memref<16x128xf32, #tpu.memory_space<vmem>>, vector<16x128xf32>
    tpu.vector_store %arg3[%c0_8, %c0_9], %17 {strides = array<i32>} : memref<16x128xf32, #tpu.memory_space<vmem>>, vector<16x128xf32>,
    return
  }
  func.func @transform_1(%arg0: i32, %arg1: memref<16xi32, #tpu.memory_space<smem>>) -> (i32, i32) {
    %c0_i32 = arith.constant 0 : i32
    %c0_i32_0 = arith.constant 0 : i32
    return %arg0, %c0_i32 : i32, i32
  }
}

</mosaic_0001>

<bundles_post_ra>
// kernel: tpu_custom_call.1
= control target key start
LH: loop header
LB: loop body
LE: loop exit
PB: predicated region body
PF: predicated region fallthrough
CT: control target
= control target key end

     0   :  { %s227_s12 = smov [#allocation5]   ;;  %s272_s0 = inlined_call_operand.hbm [shape: s32[16], index: 0, kind: input, shape index: {}]   ;;  %s273_s1 = inlined_call_operand.hbm [shape: f32[64,128], index: 1, kind: input, shape index: {}]   ;;  %s274_s2 = inlined_call_operand.hbm [shape: f32[16,128], index: 2, kind: output, shape index: {}]  }
   0x1   :  { %s8_s11 = sshll.u32 %s272_s0, 4  ;;  %s9_s11 = int_to_ptr.hbm [resolvable:$true] %s8_s11 }
   0x2   :  { %11 = dma.hbm_to_smem %s9_s11, 16, %s227_s12, [#allocation4] }
   0x3   :  { %217 = dma.done.wait [#allocation4], 16 }
   0x4   :  { %218 = vsyncadd [#allocation4], 4294967280 }
   0x5   :  { %14 = sfence }
   0x6   :  { %15 = vsyncpa [#allocation7], 0  ;;  %s250_s13 = smov 0  }
   0x7 LB: > { %s28_s14 = sld [smem:[#allocation5 + %s225_s13]]  ;;  %s30_s15 = scalar_lea.vmem [#allocation2], %s225_s13  ;;  %s225_s13 = sphi %s250_s13, %s27_s13  }
   0x8   : > { %s40_s16 = sshll.u32 %s30_s15, 4  ;;  %s169_s24 = scalar_lea.hbm %s273_s1, 64  ;;  %s41_s16 = int_to_ptr.vmem [resolvable:$true] %s40_s16 }
   0xd   : > { %s29_s18 = scalar_lea.hbm %s273_s1, %s28_s14 }
   0xe   : > { %s38_s19 = sshll.u32 %s29_s18, 4  ;;  %s39_s19 = int_to_ptr.hbm [resolvable:$true] %s38_s19 }
   0xf   : > { %s165_s20 = sshra.s32 %s39_s19, 4  ;;  %s166_s20 = int_to_ptr.hbm [resolvable:$true] %s165_s20 }
  0x10   : > { %s167_s21 = scalar_lea.hbm %s166_s20, 1  ;;  %p170_p1 = scmp.lt.s32.totalorder %s166_s20, %s273_s1 }
  0x11   : > { %p168_p0 = scmp.ne.s32.totalorder %s166_s20, %s167_s21  ;;  %p171_p2 = scmp.lt.s32.totalorder %s169_s24, %s167_s21 }
  0x13   : > { %p172_p3 = por %p171_p2, %p170_p1 }
  0x15   : > { %p173_p4 = pnand %p172_p3, %p168_p0 }
  0x17   : > { %176 = shalt.err (!%p173_p4)  }
  0x18   : > { %s177_s27 = sshra.s32 %s41_s16, 4  ;;  %s228_s29 = smov [#allocation2]   ;;  %s178_s27 = int_to_ptr.vmem [resolvable:$true] %s177_s27 }
  0x19   : > { %s179_s28 = scalar_lea.vmem %s178_s27, 1  ;;  %s181_s30 = scalar_lea.vmem %s228_s29, 32 }
  0x1a   : > { %p180_p5 = scmp.ne.s32.totalorder %s178_s27, %s179_s28  ;;  %p182_p6 = scmp.lt.s32.totalorder %s178_s27, [#allocation2] }
  0x1b   : > { %p183_p7 = scmp.lt.s32.totalorder %s181_s30, %s179_s28 }
  0x1d   : > { %p184_p8 = por %p183_p7, %p182_p6 }
  0x1f   : > { %p185_p9 = pnand %p184_p8, %p180_p5 }
  0x21   : > { %188 = shalt.err (!%p185_p9)  }
  0x22   : > { %43 = dma.hbm_to_vmem [thread:$0]  %s39_s19, 16, %s41_s16, [#allocation3] }
  0x23   : > { %s27_s13 = sadd.s32 1, %s225_s13  }
  0x24   : > { %p24_p10 = scmp.ge.s32.totalorder %s27_s13, 16  }
  0x26   :  { %26 = sbr.rel (!%p24_p10) target bundleno = 7 (0x7), region = 57 }
  0x2b   :  { %219 = dma.done.wait [#allocation3], 256 }
  0x2c   :  { %220 = vsyncadd [#allocation3], 4294967040  ;;  %s229_s3 = smov [#allocation6]   ;;  %s94_s7 = sshll.u32 %s274_s2, 4  ;;  %v82_v0 = vld [vmem:[#allocation2] sm:$0xff]  ;;  %v83_v1 = vld [vmem:[#allocation2 + $0x8] sm:$0xff]  ;;  %s95_s7 = int_to_ptr.hbm [resolvable:$true] %s94_s7 }
  0x2d   :  { %s92_s4 = sshll.u32 %s229_s3, 4  ;;  %v84_v2 = vmul.f32 11.313708, %v82_v0  ;;  %v85_v3 = vmul.f32 11.313708, %v83_v1  ;;  %s230_s8 = smov 128   ;;  %s93_s4 = int_to_ptr.vmem [resolvable:$true] %s92_s4 }
  0x2e   :  { %s231_s9 = smov 8  }
  0x2f   :  { %86 = vst [vmem:[#allocation6] sm:$0xff] %v84_v2 }
  0x30   :  { %87 = vst [vmem:[#allocation6 + $0x8] sm:$0xff] %v85_v3 }
  0x31   :  { %100 = dma.vmem_to_hbm [thread:$0]  %s93_s4, 256, %s95_s7, [#allocation7], %s230_s8, %s230_s8, %s231_s9  }
  0x32   :  { %221 = dma.done.wait [#allocation7], 256  }
  0x33   :  { %222 = vsyncadd [#allocation7], 4294967040 }
  0x34   :  { %105 = vsyncpa [#allocation7], 1 }
  0x35   :  { %106 = vsyncmov [#allocation3] }
  0x38   :  { %s107_s1 = vpop.sfrf %106 }
  0x39   :  { %p137_p11 = scmp.ne.s32.totalorder %s107_s1, 0 }
  0x3b   :  { %111 = shalt.err (%p137_p11)  }
  0x3c   :  { %113 = vsyncmov [#allocation3 + $0x1] }
  0x3f   :  { %s114_s2 = vpop.sfrf %113 }
  0x40   :  { %p138_p12 = scmp.ne.s32.totalorder %s114_s2, 0 }
  0x42   :  { %118 = shalt.err (%p138_p12)  }

</bundles_post_ra>
